<compile_context>
chip_gen: v5e
topology: v5e:2x2
jax: 0.10.0
libtpu: 0.0.40
codegen_flags: <defaults>
</compile_context>

<pallas_src>
import math

import jax
import jax.numpy as jnp
from jax.experimental import pallas as pl
from jax.experimental.pallas import tpu as pltpu


# Row layout of the packed small-parameter array (f32, [8, H1]):
#   row 0: b1 (H1 entries)    row 1: b2 (first H2)
#   row 2: w3 (first H2)      row 3: b3 (element [0]);  rows 4..7 unused (zero)
_ROW_B1, _ROW_B2, _ROW_W3, _ROW_B3 = 0, 1, 2, 3


# ----------------------------------------------------------------------------- kernel
def bnn_fused_kernel(x_ref, w1_ref, w2_ref, small_ref, out_ref):
    """One batch tile of: x@W1+b1 -> ReLU -> @W2+b2 -> ReLU -> <., w3>+b3."""
    f32 = jnp.float32
    h2_dim = w2_ref.shape[1]

    b1 = small_ref[_ROW_B1:_ROW_B1 + 1, :]           # (1, H1)
    b2 = small_ref[_ROW_B2:_ROW_B2 + 1, 0:h2_dim]    # (1, H2)
    w3 = small_ref[_ROW_W3:_ROW_W3 + 1, 0:h2_dim]    # (1, H2)  row of the [H2,1] weight
    b3 = small_ref[_ROW_B3:_ROW_B3 + 1, 0:1]         # (1, 1)

    # Dropout(0.5) is identity in eval/inference mode.
    h1 = jnp.dot(x_ref[...], w1_ref[...], preferred_element_type=f32) + b1
    h1 = jnp.maximum(h1, 0.0)                                        # ReLU
    h2 = jnp.dot(h1.astype(w2_ref.dtype), w2_ref[...], preferred_element_type=f32) + b2
    h2 = jnp.maximum(h2, 0.0)                                        # ReLU
    # out_features == 1: lane reduction (XLU) instead of an N=1 MXU matmul.
    out_ref[...] = jnp.sum(h2 * w3, axis=-1, keepdims=True) + b3


# --------------------------------------------------------------------------- sampling
def sample_weights(params, key):
    """Draw one set of Bayesian weights W = mu + sigma*eps (sigma precomputed at init).
    Returns MXU-ready bf16 W1/W2 and one packed f32 array with b1/b2/w3/b3.
    The mul/add fuses with the XLA RNG kernels, so no extra HBM pass vs. drawing eps."""
    l1, l2, l3 = params["l1"], params["l2"], params["l3"]
    kw1, kb1, kw2, kb2, kw3, kb3 = jax.random.split(key, 6)

    def draw(k, mu, sig, dtype=jnp.float32):
        eps = jax.random.normal(k, mu.shape, jnp.float32)
        return (mu + sig * eps).astype(dtype)

    w1 = draw(kw1, l1["w_mu"], l1["w_sig"], jnp.bfloat16)   # [K_PAD, H1]
    w2 = draw(kw2, l2["w_mu"], l2["w_sig"], jnp.bfloat16)   # [H1, H2]
    b1 = draw(kb1, l1["b_mu"], l1["b_sig"])                 # [H1]
    b2 = draw(kb2, l2["b_mu"], l2["b_sig"])                 # [H2]
    w3 = draw(kw3, l3["w_mu"], l3["w_sig"])                 # [H2]
    b3 = draw(kb3, l3["b_mu"], l3["b_sig"])                 # [1]

    h1_dim = w1.shape[1]
    small = jnp.zeros((8, h1_dim), jnp.float32)
    small = small.at[_ROW_B1, :].set(b1)
    small = small.at[_ROW_B2, : b2.shape[0]].set(b2)
    small = small.at[_ROW_W3, : w3.shape[0]].set(w3)
    small = small.at[_ROW_B3, 0].set(b3[0])
    return w1, w2, small


# ---------------------------------------------------------------------------- wrapper
def bayesian_net_forward(x, params, key, *, block_b=1024):
    """x: [B, ...] -> flattened -> 3-layer Bayesian MLP. Returns logits [B, 1]."""
    B = x.shape[0]
    w1, w2, small = sample_weights(params, key)
    k_pad, h1_dim = w1.shape
    h2_dim = w2.shape[1]

    # Flatten + cast activations to bf16 (f32 accumulation happens on the MXU); zero-pad
    # the contraction dim 811 -> 896 (pad rows of W1 meet zero x columns -> inert).
    x2d = x.reshape(B, -1).astype(jnp.bfloat16)
    in_dim = x2d.shape[1]
    if in_dim != k_pad:
        x2d = jnp.pad(x2d, ((0, 0), (0, k_pad - in_dim)))

    # Batch tiling: one grid point for small B; a "parallel" batch grid for large B
    # (uses both TensorCores on v7x and bounds the streamed-x VMEM footprint).
    tm = B if B <= block_b else block_b
    grid_b = pl.cdiv(B, tm)
    b_pad = grid_b * tm
    if b_pad != B:
        x2d = jnp.pad(x2d, ((0, b_pad - B), (0, 0)))

    def resident(arr):
        # Same block index every grid step -> DMA'd once, stays resident in VMEM.
        return pl.BlockSpec(arr.shape, lambda i: (0, 0))

    flops = 2 * b_pad * (k_pad * h1_dim + h1_dim * h2_dim + h2_dim)
    bytes_accessed = (
        int(x2d.size) * 2 + b_pad * 4                       # bf16 x in, f32 logits out
        + int(w1.size) * 2 + int(w2.size) * 2 + int(small.size) * 4
    )

    out = pl.pallas_call(
        bnn_fused_kernel,
        out_shape=jax.ShapeDtypeStruct((b_pad, 1), jnp.float32),
        grid=(grid_b,),
        in_specs=[
            pl.BlockSpec((tm, k_pad), lambda i: (i, 0)),     # streamed per batch tile
            resident(w1), resident(w2), resident(small),      # resident weights
        ],
        out_specs=pl.BlockSpec((tm, 1), lambda i: (i, 0)),
        compiler_params=pltpu.CompilerParams(
            dimension_semantics=("parallel",),
            # Explicit so block_b=1024 (bf16 x, double-buffered) also fits v5e's
            # scoped-VMEM budget; at/below the v6e / v7x defaults.
            vmem_limit_bytes=32 << 20,
        ),
        cost_estimate=pl.CostEstimate(
            flops=flops, transcendentals=0, bytes_accessed=bytes_accessed
        ),
    )(x2d, w1, w2, small)
    return out[:B]


# --------------------------------------------------------------------------- reference
def reference_forward(x, params, key):
    """Pure-JAX reference using the identical weight draw (same key -> same weights)."""
    w1, w2, small = sample_weights(params, key)
    h2_dim = w2.shape[1]
    b1 = small[_ROW_B1, :]
    b2 = small[_ROW_B2, :h2_dim]
    w3 = small[_ROW_W3, :h2_dim]
    b3 = small[_ROW_B3, 0]
    x2d = x.reshape(x.shape[0], -1).astype(jnp.bfloat16)
    x2d = jnp.pad(x2d, ((0, 0), (0, w1.shape[0] - x2d.shape[1])))
    h1 = jnp.maximum(jnp.dot(x2d, w1, preferred_element_type=jnp.float32) + b1, 0.0)
    h2 = jnp.maximum(
        jnp.dot(h1.astype(jnp.bfloat16), w2, preferred_element_type=jnp.float32) + b2, 0.0
    )
    return jnp.sum(h2 * w3, axis=-1, keepdims=True) + b3


# ------------------------------------------------------------------------------- init
def init_params(in_dim=811, h1_dim=256, h2_dim=64, out_dim=1,
                prior_sigma=0.1, seed=2022, pad_to=128):
    """torchbnn BayesLinear init: weight_mu ~ U(-1/sqrt(in), 1/sqrt(in)),
    weight_log_sigma = log(prior_sigma) — stored here pre-exp'd as sigma so no exp is
    ever executed per forward.  Weights are kept in [in(_padded), out] kernel layout;
    the layer-3 weight (out_dim == 1) is a length-H2 row for the kernel's lane reduction."""
    assert out_dim == 1, "kernel's layer-3 lane reduction assumes out_dim == 1"
    key = jax.random.PRNGKey(seed)
    k_pad = ((in_dim + pad_to - 1) // pad_to) * pad_to

    def layer(k, din, dout, din_pad=None):
        kw, kb = jax.random.split(k)
        stdv = 1.0 / math.sqrt(din)
        w_mu = jax.random.uniform(kw, (din, dout), jnp.float32, -stdv, stdv)
        w_sig = jnp.full((din, dout), prior_sigma, jnp.float32)
        if din_pad is not None and din_pad != din:
            w_mu = jnp.pad(w_mu, ((0, din_pad - din), (0, 0)))   # pad rows sample to 0
            w_sig = jnp.pad(w_sig, ((0, din_pad - din), (0, 0)))
        b_mu = jax.random.uniform(kb, (dout,), jnp.float32, -stdv, stdv)
        b_sig = jnp.full((dout,), prior_sigma, jnp.float32)
        return {"w_mu": w_mu, "w_sig": w_sig, "b_mu": b_mu, "b_sig": b_sig}

    k1, k2, k3 = jax.random.split(key, 3)
    params = {
        "l1": layer(k1, in_dim, h1_dim, k_pad),
        "l2": layer(k2, h1_dim, h2_dim),
    }
    kw, kb = jax.random.split(k3)
    stdv = 1.0 / math.sqrt(h2_dim)
    params["l3"] = {
        "w_mu": jax.random.uniform(kw, (h2_dim,), jnp.float32, -stdv, stdv),
        "w_sig": jnp.full((h2_dim,), prior_sigma, jnp.float32),
        "b_mu": jax.random.uniform(kb, (1,), jnp.float32, -stdv, stdv),
        "b_sig": jnp.full((1,), prior_sigma, jnp.float32),
    }
    return params


# ------------------------------------------------------------------------------- main
if __name__ == "__main__":
    IN_DIM, H1, H2, OUT = 811, 256, 64, 1
    B = 8

    params = init_params(IN_DIM, H1, H2, OUT)

    key = jax.random.PRNGKey(0)
    k_x, k_eps = jax.random.split(key)
    x = jax.random.normal(k_x, (B, IN_DIM), dtype=jnp.float32)

    fwd = jax.jit(bayesian_net_forward)
    logits = fwd(x, params, k_eps)
    jax.block_until_ready(logits)

    assert logits.shape == (B, OUT), logits.shape
    assert bool(jnp.all(jnp.isfinite(logits)))

    ref = reference_forward(x, params, k_eps)
    assert jnp.allclose(logits, ref, rtol=2e-2, atol=2e-2), (logits, ref)
    print("KERNEL_OK")
</pallas_src>

<mosaic_0001>
module attributes {stable_mosaic.version = 11 : i64} {
  func.func @bnn_fused_kernel(%arg0: i32, %arg1: memref<8x896xbf16, #tpu.memory_space<vmem>>, %arg2: memref<896x256xbf16, #tpu.memory_space<vmem>>, %arg3: memref<256x64xbf16, #tpu.memory_space<vmem>>, %arg4: memref<8x256xf32, #tpu.memory_space<vmem>>, %arg5: memref<8x1xf32, #tpu.memory_space<vmem>>) attributes {dimension_semantics = [#tpu.dimension_semantics<parallel>], iteration_bounds = array<i64: 1>, scalar_prefetch = 0 : i64, scratch_operands = 0 : i64, tpu.core_type = #tpu.core_type<tc>, window_params = [{transform_indices = @transform_0, window_bounds = array<i64: 8, 896>}, {pipeline_mode = #tpu.pipeline_mode<synchronous>, transform_indices = @transform_1, window_bounds = array<i64: 896, 256>}, {pipeline_mode = #tpu.pipeline_mode<synchronous>, transform_indices = @transform_2, window_bounds = array<i64: 256, 64>}, {pipeline_mode = #tpu.pipeline_mode<synchronous>, transform_indices = @transform_3, window_bounds = array<i64: 8, 256>}, {transform_indices = @transform_4, window_bounds = array<i64: 8, 1>}]} {
    %c0 = arith.constant 0 : index
    %c0_0 = arith.constant 0 : index
    %0 = vector.load %arg4[%c0, %c0_0] : memref<8x256xf32, #tpu.memory_space<vmem>>, vector<1x256xf32>
    %c1 = arith.constant 1 : index
    %c0_1 = arith.constant 0 : index
    %1 = vector.load %arg4[%c1, %c0_1] : memref<8x256xf32, #tpu.memory_space<vmem>>, vector<1x64xf32>
    %c2 = arith.constant 2 : index
    %c0_2 = arith.constant 0 : index
    %2 = vector.load %arg4[%c2, %c0_2] : memref<8x256xf32, #tpu.memory_space<vmem>>, vector<1x64xf32>
    %c3 = arith.constant 3 : index
    %c0_3 = arith.constant 0 : index
    %3 = vector.load %arg4[%c3, %c0_3] : memref<8x256xf32, #tpu.memory_space<vmem>>, vector<1x1xf32>
    %c0_4 = arith.constant 0 : index
    %c0_5 = arith.constant 0 : index
    %4 = vector.load %arg1[%c0_4, %c0_5] : memref<8x896xbf16, #tpu.memory_space<vmem>>, vector<8x896xbf16>
    %c0_6 = arith.constant 0 : index
    %c0_7 = arith.constant 0 : index
    %5 = vector.load %arg2[%c0_6, %c0_7] : memref<896x256xbf16, #tpu.memory_space<vmem>>, vector<896x256xbf16>
    %cst = arith.constant dense<0.000000e+00> : vector<8x256xf32>
    %6 = tpu.matmul %4, %5, %cst {dimension_numbers = #tpu.dot_dimension_numbers<[1], [0], [0], [1], [0, 0, 1, 1], [], []>} : vector<8x896xbf16>, vector<896x256xbf16>, vector<8x256xf32> -> vector<8x256xf32>
    %7 = vector.broadcast %0 : vector<1x256xf32> to vector<8x256xf32>
    %8 = arith.addf %6, %7 : vector<8x256xf32>
    %cst_8 = arith.constant 0.000000e+00 : f32
    %9 = vector.broadcast %cst_8 : f32 to vector<8x256xf32>
    %10 = arith.maximumf %8, %9 : vector<8x256xf32>
    %11 = arith.truncf %10 : vector<8x256xf32> to vector<8x256xbf16>
    %c0_9 = arith.constant 0 : index
    %c0_10 = arith.constant 0 : index
    %12 = vector.load %arg3[%c0_9, %c0_10] : memref<256x64xbf16, #tpu.memory_space<vmem>>, vector<256x64xbf16>
    %cst_11 = arith.constant dense<0.000000e+00> : vector<8x64xf32>
    %13 = tpu.matmul %11, %12, %cst_11 {dimension_numbers = #tpu.dot_dimension_numbers<[1], [0], [0], [1], [0, 0, 1, 1], [], []>} : vector<8x256xbf16>, vector<256x64xbf16>, vector<8x64xf32> -> vector<8x64xf32>
    %14 = vector.broadcast %1 : vector<1x64xf32> to vector<8x64xf32>
    %15 = arith.addf %13, %14 : vector<8x64xf32>
    %cst_12 = arith.constant 0.000000e+00 : f32
    %16 = vector.broadcast %cst_12 : f32 to vector<8x64xf32>
    %17 = arith.maximumf %15, %16 : vector<8x64xf32>
    %18 = vector.broadcast %2 : vector<1x64xf32> to vector<8x64xf32>
    %19 = arith.mulf %17, %18 : vector<8x64xf32>
    %cst_13 = arith.constant dense<0.000000e+00> : vector<8xf32>
    %20 = vector.multi_reduction <add>, %19, %cst_13 [1] : vector<8x64xf32> to vector<8xf32>
    %21 = vector.shape_cast %20 : vector<8xf32> to vector<8x1xf32>
    %22 = vector.broadcast %3 : vector<1x1xf32> to vector<8x1xf32>
    %23 = arith.addf %21, %22 : vector<8x1xf32>
    %c0_14 = arith.constant 0 : index
    %c0_15 = arith.constant 0 : index
    %24 = vector.load %arg5[%c0_14, %c0_15] : memref<8x1xf32, #tpu.memory_space<vmem>>, vector<8x1xf32>
    tpu.vector_store %arg5[%c0_14, %c0_15], %23 {strides = array<i32>} : memref<8x1xf32, #tpu.memory_space<vmem>>, vector<8x1xf32>,
    return
  }
  func.func @transform_0(%arg0: i32) -> (i32, i32) {
    %c0_i32 = arith.constant 0 : i32
    %c0_i32_0 = arith.constant 0 : i32
    return %arg0, %c0_i32 : i32, i32
  }
  func.func @transform_1(%arg0: i32) -> (i32, i32) {
    %c0_i32 = arith.constant 0 : i32
    %c0_i32_0 = arith.constant 0 : i32
    %c0_i32_1 = arith.constant 0 : i32
    return %c0_i32, %c0_i32_0 : i32, i32
  }
  func.func @transform_2(%arg0: i32) -> (i32, i32) {
    %c0_i32 = arith.constant 0 : i32
    %c0_i32_0 = arith.constant 0 : i32
    %c0_i32_1 = arith.constant 0 : i32
    return %c0_i32, %c0_i32_0 : i32, i32
  }
  func.func @transform_3(%arg0: i32) -> (i32, i32) {
    %c0_i32 = arith.constant 0 : i32
    %c0_i32_0 = arith.constant 0 : i32
    %c0_i32_1 = arith.constant 0 : i32
    return %c0_i32, %c0_i32_0 : i32, i32
  }
  func.func @transform_4(%arg0: i32) -> (i32, i32) {
    %c0_i32 = arith.constant 0 : i32
    %c0_i32_0 = arith.constant 0 : i32
    return %arg0, %c0_i32 : i32, i32
  }
}

</mosaic_0001>

<bundles_post_ra>
// kernel: bayesian_net_forward.1
= control target key start
LH: loop header
LB: loop body
LE: loop exit
PB: predicated region body
PF: predicated region fallthrough
CT: control target
= control target key end

     0   :  { %vm1069_vm0 = vcmask 523264   ;;  %vm1074_vm1 = vcmask 7168   ;;  %s2520_s1 = inlined_call_operand.vmem [shape: bf16[896,256], index: 1, kind: input, shape index: {}]   ;;  %s2521_s0 = inlined_call_operand.vmem [shape: bf16[8,896], index: 0, kind: input, shape index: {}]   ;;  %s2522_s2 = inlined_call_operand.vmem [shape: bf16[256,64], index: 2, kind: input, shape index: {}]   ;;  %s2523_s3 = inlined_call_operand.vmem [shape: f32[8,256], index: 3, kind: input, shape index: {}]   ;;  %s2524_s4 = inlined_call_operand.vmem [shape: f32[8,1], index: 4, kind: output, shape index: {}]  }
   0x1   :  { %v1138_v0 = vld [vmem:[%s2520_s1 + $0x70] sm:$0xf]  ;;  %v1607_v1 = vld [vmem:[%s2520_s1 + $0x74] sm:$0xf0]  ;;  %v1130_v9 = vld [vmem:[%s2520_s1 + $0x60] sm:$0xf] }
   0x2   :  { %v1202_v2 = vld [vmem:[%s2520_s1 + $0xf0] sm:$0xf]  ;;  %v1139_v3 = vor.u32 %v1607_v1, %v1138_v0  ;;  %v1623_v4 = vld [vmem:[%s2520_s1 + $0xf4] sm:$0xf0]  ;;  %v1605_v10 = vld [vmem:[%s2520_s1 + $0x64] sm:$0xf0] }
   0x3   :  { %v1266_v5 = vld [vmem:[%s2520_s1 + $0x170] sm:$0xf]  ;;  %v1639_v6 = vld [vmem:[%s2520_s1 + $0x174] sm:$0xf0]  ;;  %v1203_v7 = vor.u32 %v1623_v4, %v1202_v2  ;;  %v1194_v11 = vld [vmem:[%s2520_s1 + $0xe0] sm:$0xf]  ;;  %v1131_v12 = vor.u32 %v1605_v10, %v1130_v9 }
   0x4   :  { %v1267_v8 = vor.u32 %v1639_v6, %v1266_v5  ;;  %727 = vmatpush.bf16.msra.mxu0 %v1139_v3  ;;  %v1621_v13 = vld [vmem:[%s2520_s1 + $0xe4] sm:$0xf0]  ;;  %v1258_v14 = vld [vmem:[%s2520_s1 + $0x160] sm:$0xf]  ;;  %v1122_v18 = vld [vmem:[%s2520_s1 + $0x50] sm:$0xf] }
   0x5   :  { %v1637_v15 = vld [vmem:[%s2520_s1 + $0x164] sm:$0xf0]  ;;  %740 = vmatpush.bf16.msra.mxu1 %v1203_v7  ;;  %v1195_v16 = vor.u32 %v1621_v13, %v1194_v11  ;;  %v1603_v19 = vld [vmem:[%s2520_s1 + $0x54] sm:$0xf0]  ;;  %v1186_v20 = vld [vmem:[%s2520_s1 + $0xd0] sm:$0xf] }
   0x6   :  { %753 = vmatpush.bf16.msra.mxu2 %v1267_v8  ;;  %v1259_v17 = vor.u32 %v1637_v15, %v1258_v14  ;;  %v1619_v21 = vld [vmem:[%s2520_s1 + $0xd4] sm:$0xf0]  ;;  %v1250_v22 = vld [vmem:[%s2520_s1 + $0x150] sm:$0xf]  ;;  %v1123_v24 = vor.u32 %v1603_v19, %v1122_v18  ;;  %v1114_v25 = vld [vmem:[%s2520_s1 + $0x40] sm:$0xf] }
   0x7   :  { %v1635_v23 = vld [vmem:[%s2520_s1 + $0x154] sm:$0xf0]  ;;  %v1601_v26 = vld [vmem:[%s2520_s1 + $0x44] sm:$0xf0]  ;;  %v1187_v27 = vor.u32 %v1619_v21, %v1186_v20  ;;  %v1178_v29 = vld [vmem:[%s2520_s1 + $0xc0] sm:$0xf] }
   0x8   :  { %728 = vmatpush.bf16.msra.mxu0 %v1131_v12  ;;  %v1251_v28 = vor.u32 %v1635_v23, %v1250_v22  ;;  %v1330_v30 = vld [vmem:[%s2520_s1 + $0x1f0] sm:$0xf]  ;;  %v1655_v31 = vld [vmem:[%s2520_s1 + $0x1f4] sm:$0xf0]  ;;  %v1617_v32 = vld [vmem:[%s2520_s1 + $0xc4] sm:$0xf0]  ;;  %v1115_v37 = vor.u32 %v1601_v26, %v1114_v25 }
   0x9   :  { %741 = vmatpush.bf16.msra.mxu1 %v1195_v16  ;;  %v1242_v33 = vld [vmem:[%s2520_s1 + $0x140] sm:$0xf]  ;;  %v1633_v34 = vld [vmem:[%s2520_s1 + $0x144] sm:$0xf0]  ;;  %v1331_v35 = vor.u32 %v1655_v31, %v1330_v30  ;;  %v1106_v38 = vld [vmem:[%s2520_s1 + $0x30] sm:$0xf]  ;;  %v1179_v41 = vor.u32 %v1617_v32, %v1178_v29 }
   0xa   :  { %754 = vmatpush.bf16.msra.mxu2 %v1259_v17  ;;  %v1322_v36 = vld [vmem:[%s2520_s1 + $0x1e0] sm:$0xf]  ;;  %v1599_v39 = vld [vmem:[%s2520_s1 + $0x34] sm:$0xf0]  ;;  %v1653_v40 = vld [vmem:[%s2520_s1 + $0x1e4] sm:$0xf0]  ;;  %v1243_v42 = vor.u32 %v1633_v34, %v1242_v33 }
   0xb   :  { %766 = vmatpush.bf16.msra.mxu3 %v1331_v35  ;;  %v1170_v43 = vld [vmem:[%s2520_s1 + $0xb0] sm:$0xf]  ;;  %v1615_v44 = vld [vmem:[%s2520_s1 + $0xb4] sm:$0xf0]  ;;  %v1323_v46 = vor.u32 %v1653_v40, %v1322_v36  ;;  %v1107_v50 = vor.u32 %v1599_v39, %v1106_v38  ;;  %v1098_v51 = vld [vmem:[%s2520_s1 + $0x20] sm:$0xf] }
   0xc   :  { %729 = vmatpush.bf16.msra.mxu0 %v1123_v24  ;;  %v1234_v45 = vld [vmem:[%s2520_s1 + $0x130] sm:$0xf]  ;;  %v1631_v47 = vld [vmem:[%s2520_s1 + $0x134] sm:$0xf0]  ;;  %v1597_v52 = vld [vmem:[%s2520_s1 + $0x24] sm:$0xf0]  ;;  %v1171_v54 = vor.u32 %v1615_v44, %v1170_v43 }
   0xd   :  { %742 = vmatpush.bf16.msra.mxu1 %v1187_v27  ;;  %v1314_v48 = vld [vmem:[%s2520_s1 + $0x1d0] sm:$0xf]  ;;  %v1651_v49 = vld [vmem:[%s2520_s1 + $0x1d4] sm:$0xf0]  ;;  %v1235_v55 = vor.u32 %v1631_v47, %v1234_v45  ;;  %v1162_v56 = vld [vmem:[%s2520_s1 + $0xa0] sm:$0xf]  ;;  %v1099_v62 = vor.u32 %v1597_v52, %v1098_v51 }
   0xe   :  { %755 = vmatpush.bf16.msra.mxu2 %v1251_v28  ;;  %v1315_v53 = vor.u32 %v1651_v49, %v1314_v48  ;;  %v1306_v57 = vld [vmem:[%s2520_s1 + $0x1c0] sm:$0xf]  ;;  %v1649_v58 = vld [vmem:[%s2520_s1 + $0x1c4] sm:$0xf0]  ;;  %v1090_v63 = vld [vmem:[%s2520_s1 + $0x10] sm:$0xf] }
   0xf   :  { %767 = vmatpush.bf16.msra.mxu3 %v1323_v46  ;;  %v1613_v59 = vld [vmem:[%s2520_s1 + $0xa4] sm:$0xf0]  ;;  %v1226_v60 = vld [vmem:[%s2520_s1 + $0x120] sm:$0xf]  ;;  %v1595_v0 = vld [vmem:[%s2520_s1 + $0x14] sm:$0xf0]  ;;  %v1307_v1 = vor.u32 %v1649_v58, %v1306_v57 }
  0x10   :  { %730 = vmatpush.bf16.msra.mxu0 %v1115_v37  ;;  %v1629_v61 = vld [vmem:[%s2520_s1 + $0x124] sm:$0xf0]  ;;  %v1163_v2 = vor.u32 %v1613_v59, %v1162_v56  ;;  %v1154_v4 = vld [vmem:[%s2520_s1 + $0x90] sm:$0xf]  ;;  %v1647_v6 = vld [vmem:[%s2520_s1 + $0x1b4] sm:$0xf0]  ;;  %v1091_v10 = vor.u32 %v1595_v0, %v1090_v63 }
  0x11   :  { %743 = vmatpush.bf16.msra.mxu1 %v1179_v41  ;;  %v1227_v3 = vor.u32 %v1629_v61, %v1226_v60  ;;  %v1298_v5 = vld [vmem:[%s2520_s1 + $0x1b0] sm:$0xf]  ;;  %v1611_v7 = vld [vmem:[%s2520_s1 + $0x94] sm:$0xf0]  ;;  %v1082_v11 = vld [vmem:[%s2520_s1] sm:$0xf] }
  0x12   :  { %756 = vmatpush.bf16.msra.mxu2 %v1243_v42  ;;  %v1218_v8 = vld [vmem:[%s2520_s1 + $0x110] sm:$0xf]  ;;  %v1627_v9 = vld [vmem:[%s2520_s1 + $0x114] sm:$0xf0]  ;;  %v1593_v12 = vld [vmem:[%s2520_s1 + $0x4] sm:$0xf0]  ;;  %v1299_v14 = vor.u32 %v1647_v6, %v1298_v5  ;;  %v1155_v15 = vor.u32 %v1611_v7, %v1154_v4 }
  0x13   :  { %768 = vmatpush.bf16.msra.mxu3 %v1315_v53  ;;  %v1146_v13 = vld [vmem:[%s2520_s1 + $0x80] sm:$0xf]  ;;  %v1219_v16 = vor.u32 %v1627_v9, %v1218_v8  ;;  %v1609_v17 = vld [vmem:[%s2520_s1 + $0x84] sm:$0xf0]  ;;  %v1394_v22 = vld [vmem:[%s2520_s1 + $0x270] sm:$0xf]  ;;  %v1083_v26 = vor.u32 %v1593_v12, %v1082_v11 }
  0x14   :  { %731 = vmatpush.bf16.msra.mxu0 %v1107_v50  ;;  %v1290_v18 = vld [vmem:[%s2520_s1 + $0x1a0] sm:$0xf]  ;;  %v1645_v19 = vld [vmem:[%s2520_s1 + $0x1a4] sm:$0xf0]  ;;  %v1671_v23 = vld [vmem:[%s2520_s1 + $0x274] sm:$0xf0]  ;;  %v1147_v30 = vor.u32 %v1609_v17, %v1146_v13 }
  0x15   :  { %744 = vmatpush.bf16.msra.mxu1 %v1171_v54  ;;  %v1210_v20 = vld [vmem:[%s2520_s1 + $0x100] sm:$0xf]  ;;  %v1625_v21 = vld [vmem:[%s2520_s1 + $0x104] sm:$0xf0]  ;;  %v1458_v24 = vld [vmem:[%s2520_s1 + $0x2f0] sm:$0xf]  ;;  %v1291_v29 = vor.u32 %v1645_v19, %v1290_v18  ;;  %v1395_v34 = vor.u32 %v1671_v23, %v1394_v22 }
  0x16   :  { %757 = vmatpush.bf16.msra.mxu2 %v1235_v55  ;;  %v1687_v25 = vld [vmem:[%s2520_s1 + $0x2f4] sm:$0xf0]  ;;  %v1522_v27 = vld [vmem:[%s2520_s1 + $0x370] sm:$0xf]  ;;  %v1211_v31 = vor.u32 %v1625_v21, %v1210_v20  ;;  %v1386_v36 = vld [vmem:[%s2520_s1 + $0x260] sm:$0xf] }
  0x17   :  { %769 = vmatpush.bf16.msra.mxu3 %v1307_v1  ;;  %v1703_v28 = vld [vmem:[%s2520_s1 + $0x374] sm:$0xf0]  ;;  %v1282_v32 = vld [vmem:[%s2520_s1 + $0x190] sm:$0xf]  ;;  %v1459_v35 = vor.u32 %v1687_v25, %v1458_v24  ;;  %v1669_v37 = vld [vmem:[%s2520_s1 + $0x264] sm:$0xf0] }
  0x18   :  { %732 = vmatpush.bf16.msra.mxu0 %v1099_v62  ;;  %v1643_v33 = vld [vmem:[%s2520_s1 + $0x194] sm:$0xf0]  ;;  %v1523_v38 = vor.u32 %v1703_v28, %v1522_v27  ;;  %v1450_v39 = vld [vmem:[%s2520_s1 + $0x2e0] sm:$0xf]  ;;  %v1685_v40 = vld [vmem:[%s2520_s1 + $0x2e4] sm:$0xf0]  ;;  %v1387_v46 = vor.u32 %v1669_v37, %v1386_v36 }
  0x19   :  { %745 = vmatpush.bf16.msra.mxu1 %v1163_v2  ;;  %v22_v41 = vld [vmem:[%s2521_s0 + $0x8] sm:$0xff]  ;;  %v1514_v42 = vld [vmem:[%s2520_s1 + $0x360] sm:$0xf]  ;;  %v1283_v44 = vor.u32 %v1643_v33, %v1282_v32  ;;  %v1451_v50 = vor.u32 %v1685_v40, %v1450_v39  ;;  %v1378_v51 = vld [vmem:[%s2520_s1 + $0x250] sm:$0xf] }
  0x1a   :  { %758 = vmatpush.bf16.msra.mxu2 %v1227_v3  ;;  %v1701_v43 = vld [vmem:[%s2520_s1 + $0x364] sm:$0xf0]  ;;  %v148_v45 = vunpack.c.l.b16 %v22_v41  ;;  %v1274_v47 = vld [vmem:[%s2520_s1 + $0x180] sm:$0xf]  ;;  %v1606_v52 = vld [vmem:[%s2520_s1 + $0x74] sm:$0xf]  ;;  %v149_v61 = vunpack.c.h.b16 %v22_v41 }
  0x1b   :  { %770 = vmatpush.bf16.msra.mxu3 %v1299_v14  ;;  %v1641_v48 = vld [vmem:[%s2520_s1 + $0x184] sm:$0xf0]  ;;  %v21_v49 = vld [vmem:[%s2521_s0] sm:$0xff]  ;;  %v1140_v53 = vld [vmem:[%s2520_s1 + $0x78] sm:$0xf0]  ;;  %v1515_v57 = vor.u32 %v1701_v43, %v1514_v42 }
  0x1c   :  { %733 = vmatpush.bf16.msra.mxu0 %v1091_v10  ;;  %v1988_v54 = vpack.c.b16 %v148_v45, %v148_v45  ;;  %v146_v55 = vunpack.c.l.b16 %v21_v49  ;;  %v147_v56 = vunpack.c.h.b16 %v21_v49  ;;  %v1667_v58 = vld [vmem:[%s2520_s1 + $0x254] sm:$0xf0]  ;;  %v1442_v59 = vld [vmem:[%s2520_s1 + $0x2d0] sm:$0xf]  ;;  %v1275_v0 = vor.u32 %v1641_v48, %v1274_v47  ;;  %v1370_v6 = vld [vmem:[%s2520_s1 + $0x240] sm:$0xf] }
  0x1d   :  { %746 = vmatpush.bf16.msra.mxu1 %v1155_v15  ;;  %v1683_v60 = vld [vmem:[%s2520_s1 + $0x2d4] sm:$0xf0]  ;;  %v1506_v62 = vld [vmem:[%s2520_s1 + $0x350] sm:$0xf]  ;;  %v1143_v3 = vor.u32 %v1606_v52, %v1140_v53  ;;  %v1379_v4 = vor.u32 %v1667_v58, %v1378_v51  ;;  %v1604_v7 = vld [vmem:[%s2520_s1 + $0x64] sm:$0xf]  ;;  %v2029_v13 = vpack.c.b16 %v149_v61, %v149_v61 }
  0x1e   :  { %759 = vmatpush.bf16.msra.mxu2 %v1219_v16  ;;  %v1699_v63 = vld [vmem:[%s2520_s1 + $0x354] sm:$0xf0]  ;;  %v2006_v1 = vpack.c.b16 %v146_v55, %v146_v55  ;;  %v2008_v2 = vpack.c.b16 %v147_v56, %v147_v56  ;;  %v1443_v5 = vor.u32 %v1683_v60, %v1442_v59  ;;  %v1132_v8 = vld [vmem:[%s2520_s1 + $0x68] sm:$0xf0]  ;;  %v1665_v10 = vld [vmem:[%s2520_s1 + $0x244] sm:$0xf0] }
  0x1f   :  { %771 = vmatpush.bf16.msra.mxu3 %v1291_v29  ;;  %v1507_v9 = vor.u32 %v1699_v63, %v1506_v62  ;;  %v1434_v11 = vld [vmem:[%s2520_s1 + $0x2c0] sm:$0xf]  ;;  %v1681_v12 = vld [vmem:[%s2520_s1 + $0x2c4] sm:$0xf0]  ;;  %v1135_v16 = vor.u32 %v1604_v7, %v1132_v8  ;;  %v1371_v17 = vor.u32 %v1665_v10, %v1370_v6  ;;  %v1362_v19 = vld [vmem:[%s2520_s1 + $0x230] sm:$0xf] }
  0x20   :  { %734 = vmatpush.bf16.msra.mxu0 %v1083_v26  ;;  %v1498_v14 = vld [vmem:[%s2520_s1 + $0x340] sm:$0xf]  ;;  %v1697_v15 = vld [vmem:[%s2520_s1 + $0x344] sm:$0xf0]  ;;  %v1435_v18 = vor.u32 %v1681_v12, %v1434_v11  ;;  %v1602_v20 = vld [vmem:[%s2520_s1 + $0x54] sm:$0xf] }
  0x21   :  { %747 = vmatpush.bf16.msra.mxu1 %v1147_v30  ;;  %v1124_v21 = vld [vmem:[%s2520_s1 + $0x58] sm:$0xf0]  ;;  %v1499_v22 = vor.u32 %v1697_v15, %v1498_v14  ;;  %v1663_v23 = vld [vmem:[%s2520_s1 + $0x234] sm:$0xf0]  ;;  %v1426_v24 = vld [vmem:[%s2520_s1 + $0x2b0] sm:$0xf] }
  0x22   :  { %760 = vmatpush.bf16.msra.mxu2 %v1211_v31  ;;  %v1679_v25 = vld [vmem:[%s2520_s1 + $0x2b4] sm:$0xf0]  ;;  %v1490_v26 = vld [vmem:[%s2520_s1 + $0x330] sm:$0xf]  ;;  %v1127_v28 = vor.u32 %v1602_v20, %v1124_v21  ;;  %v1363_v29 = vor.u32 %v1663_v23, %v1362_v19  ;;  %v1354_v31 = vld [vmem:[%s2520_s1 + $0x220] sm:$0xf] }
  0x23   :  { %772 = vmatpush.bf16.msra.mxu3 %v1283_v44  ;;  %735 = vmatmul.bf16.vlgmr.msra.gmra.mxu0 %v2006_v1  ;;  %v1695_v27 = vld [vmem:[%s2520_s1 + $0x334] sm:$0xf0]  ;;  %v1427_v30 = vor.u32 %v1679_v25, %v1426_v24  ;;  %v1600_v32 = vld [vmem:[%s2520_s1 + $0x44] sm:$0xf]  ;;  %v1116_v33 = vld [vmem:[%s2520_s1 + $0x48] sm:$0xf0] }
  0x24   :  { %779 = vmatpush.bf16.msrb.mxu0 %v1395_v34  ;;  %748 = vmatmul.bf16.vlgmr.msra.gmra.mxu1 %v2008_v2  ;;  %v1491_v34 = vor.u32 %v1695_v27, %v1490_v26  ;;  %v1418_v36 = vld [vmem:[%s2520_s1 + $0x2a0] sm:$0xf]  ;;  %v1677_v37 = vld [vmem:[%s2520_s1 + $0x2a4] sm:$0xf0]  ;;  %v1119_v40 = vor.u32 %v1600_v32, %v1116_v33  ;;  %v1346_v43 = vld [vmem:[%s2520_s1 + $0x210] sm:$0xf] }
  0x25   :  { %792 = vmatpush.bf16.msrb.mxu1 %v1459_v35  ;;  %761 = vmatmul.bf16.vlgmr.msra.gmra.mxu2 %v1988_v54  ;;  %v1661_v35 = vld [vmem:[%s2520_s1 + $0x224] sm:$0xf0]  ;;  %v1419_v42 = vor.u32 %v1677_v37, %v1418_v36  ;;  %v1598_v44 = vld [vmem:[%s2520_s1 + $0x34] sm:$0xf]  ;;  %v1108_v45 = vld [vmem:[%s2520_s1 + $0x38] sm:$0xf0] }
  0x26   :  { %805 = vmatpush.bf16.msrb.mxu2 %v1523_v38  ;;  %v1482_v38 = vld [vmem:[%s2520_s1 + $0x320] sm:$0xf]  ;;  %v1693_v39 = vld [vmem:[%s2520_s1 + $0x324] sm:$0xf0]  ;;  %v1355_v41 = vor.u32 %v1661_v35, %v1354_v31  ;;  %v1659_v47 = vld [vmem:[%s2520_s1 + $0x214] sm:$0xf0] }
  0x27   :  { %773 = vmatpush.bf16.msra.mxu3 %v1275_v0  ;;  %v1410_v48 = vld [vmem:[%s2520_s1 + $0x290] sm:$0xf]  ;;  %v1675_v49 = vld [vmem:[%s2520_s1 + $0x294] sm:$0xf0]  ;;  %v1338_v52 = vld [vmem:[%s2520_s1 + $0x200] sm:$0xf]  ;;  %v1347_v58 = vor.u32 %v1659_v47, %v1346_v43 }
  0x28   :  { %780 = vmatpush.bf16.msrb.mxu0 %v1387_v46  ;;  %v1483_v46 = vor.u32 %v1693_v39, %v1482_v38  ;;  %v1691_v51 = vld [vmem:[%s2520_s1 + $0x314] sm:$0xf0]  ;;  %v1657_v53 = vld [vmem:[%s2520_s1 + $0x204] sm:$0xf0]  ;;  %v1402_v55 = vld [vmem:[%s2520_s1 + $0x280] sm:$0xf]  ;;  %v1411_v59 = vor.u32 %v1675_v49, %v1410_v48 }
  0x29   :  { %793 = vmatpush.bf16.msrb.mxu1 %v1451_v50  ;;  %v1474_v50 = vld [vmem:[%s2520_s1 + $0x310] sm:$0xf]  ;;  %v1673_v56 = vld [vmem:[%s2520_s1 + $0x284] sm:$0xf0]  ;;  %v1596_v61 = vld [vmem:[%s2520_s1 + $0x24] sm:$0xf]  ;;  %v1339_v15 = vor.u32 %v1657_v53, %v1338_v52 }
  0x2a   :  { %806 = vmatpush.bf16.msrb.mxu2 %v1515_v57  ;;  %774 = vmatmul.bf16.vlgmr.msra.gmra.mxu3 %v2029_v13  ;;  %v1111_v57 = vor.u32 %v1598_v44, %v1108_v45  ;;  %v23_v60 = vld [vmem:[%s2521_s0 + $0x10] sm:$0xff]  ;;  %v1100_v62 = vld [vmem:[%s2520_s1 + $0x28] sm:$0xf0]  ;;  %v1475_v63 = vor.u32 %v1691_v51, %v1474_v50  ;;  %v1466_v0 = vld [vmem:[%s2520_s1 + $0x300] sm:$0xf] }
  0x2b   :  { %818 = vmatpush.bf16.msrb.mxu3 %v1143_v3  ;;  %v1689_v3 = vld [vmem:[%s2520_s1 + $0x304] sm:$0xf0]  ;;  %v1204_v6 = vld [vmem:[%s2520_s1 + $0xf8] sm:$0xf0]  ;;  %v1638_v7 = vld [vmem:[%s2520_s1 + $0x174] sm:$0xf]  ;;  %v1103_v10 = vor.u32 %v1596_v61, %v1100_v62  ;;  %v151_v11 = vunpack.c.h.b16 %v23_v60 }
  0x2c   :  { %781 = vmatpush.bf16.msrb.mxu0 %v1379_v4  ;;  %v24_v4 = vld [vmem:[%s2521_s0 + $0x18] sm:$0xf]  ;;  %v1268_v8 = vld [vmem:[%s2520_s1 + $0x178] sm:$0xf0]  ;;  %v1654_v12 = vld [vmem:[%s2520_s1 + $0x1f4] sm:$0xf] }
  0x2d   :  { %794 = vmatpush.bf16.msrb.mxu1 %v1443_v5  ;;  %v1622_v5 = vld [vmem:[%s2520_s1 + $0xf4] sm:$0xf]  ;;  %v1332_v14 = vld [vmem:[%s2520_s1 + $0x1f8] sm:$0xf0]  ;;  %v1620_v23 = vld [vmem:[%s2520_s1 + $0xe4] sm:$0xf] }
  0x2e   :  { %807 = vmatpush.bf16.msrb.mxu2 %v1507_v9  ;;  %v150_v9 = vunpack.c.l.b16 %v23_v60  ;;  %v1207_v19 = vor.u32 %v1622_v5, %v1204_v6  ;;  %v1594_v20 = vld [vmem:[%s2520_s1 + $0x14] sm:$0xf]  ;;  %v1092_v21 = vld [vmem:[%s2520_s1 + $0x18] sm:$0xf0]  ;;  %v1196_v24 = vld [vmem:[%s2520_s1 + $0xe8] sm:$0xf0]  ;;  %v1335_v26 = vor.u32 %v1654_v12, %v1332_v14 }
  0x2f   :  { %819 = vmatpush.bf16.msrb.mxu3 %v1135_v16  ;;  %v1403_v16 = vor.u32 %v1673_v56, %v1402_v55  ;;  %v1636_v25 = vld [vmem:[%s2520_s1 + $0x164] sm:$0xf]  ;;  %v1324_v31 = vld [vmem:[%s2520_s1 + $0x1e8] sm:$0xf0]  ;;  %v1095_v33 = vor.u32 %v1594_v20, %v1092_v21  ;;  %v1199_v35 = vor.u32 %v1620_v23, %v1196_v24  ;;  %v1188_v36 = vld [vmem:[%s2520_s1 + $0xd8] sm:$0xf0] }
  0x30   :  { %782 = vmatpush.bf16.msrb.mxu0 %v1371_v17  ;;  %v152_v17 = vunpack.c.l.b16 %v24_v4  ;;  %v2174_v27 = vpack.c.b16 %v150_v9, %v150_v9  ;;  %v1592_v37 = vld [vmem:[%s2520_s1 + $0x4] sm:$0xf]  ;;  %v1084_v38 = vld [vmem:[%s2520_s1 + $0x8] sm:$0xf0]  ;;  %v1252_v44 = vld [vmem:[%s2520_s1 + $0x158] sm:$0xf0] }
  0x31   :  { %795 = vmatpush.bf16.msrb.mxu1 %v1435_v18  ;;  %v1467_v18 = vor.u32 %v1689_v3, %v1466_v0  ;;  %v1650_v45 = vld [vmem:[%s2520_s1 + $0x1d4] sm:$0xf]  ;;  %v1087_v47 = vor.u32 %v1592_v37, %v1084_v38  ;;  %v1616_v49 = vld [vmem:[%s2520_s1 + $0xc4] sm:$0xf]  ;;  %v1180_v50 = vld [vmem:[%s2520_s1 + $0xc8] sm:$0xf0] }
  0x32   :  { %808 = vmatpush.bf16.msrb.mxu2 %v1499_v22  ;;  %v1271_v22 = vor.u32 %v1638_v7, %v1268_v8  ;;  %v2187_v32 = vpack.c.b16 %v152_v17, %v152_v17  ;;  %v1632_v53 = vld [vmem:[%s2520_s1 + $0x144] sm:$0xf]  ;;  %v1388_v56 = vld [vmem:[%s2520_s1 + $0x268] sm:$0xf0]  ;;  %v1183_v61 = vor.u32 %v1616_v49, %v1180_v50  ;;  %v1614_v62 = vld [vmem:[%s2520_s1 + $0xb4] sm:$0xf] }
  0x33   :  { %820 = vmatpush.bf16.msrb.mxu3 %v1127_v28  ;;  %v1260_v28 = vld [vmem:[%s2520_s1 + $0x168] sm:$0xf0]  ;;  %v1668_v55 = vld [vmem:[%s2520_s1 + $0x264] sm:$0xf]  ;;  %v1630_v4 = vld [vmem:[%s2520_s1 + $0x134] sm:$0xf] }
  0x34   :  { %783 = vmatpush.bf16.msrb.mxu0 %v1363_v29  ;;  %v2179_v29 = vpack.c.b16 %v151_v11, %v151_v11  ;;  %v1263_v39 = vor.u32 %v1636_v25, %v1260_v28  ;;  %v1308_v60 = vld [vmem:[%s2520_s1 + $0x1c8] sm:$0xf0]  ;;  %v1391_v0 = vor.u32 %v1668_v55, %v1388_v56  ;;  %v1666_v5 = vld [vmem:[%s2520_s1 + $0x254] sm:$0xf]  ;;  %v1380_v6 = vld [vmem:[%s2520_s1 + $0x258] sm:$0xf0] }
  0x35   :  { %796 = vmatpush.bf16.msrb.mxu1 %v1427_v30  ;;  %v1652_v30 = vld [vmem:[%s2520_s1 + $0x1e4] sm:$0xf]  ;;  %v1236_v8 = vld [vmem:[%s2520_s1 + $0x138] sm:$0xf0]  ;;  %v1646_v9 = vld [vmem:[%s2520_s1 + $0x1b4] sm:$0xf] }
  0x36   :  { %809 = vmatpush.bf16.msrb.mxu2 %v1491_v34  ;;  %v1618_v34 = vld [vmem:[%s2520_s1 + $0xd4] sm:$0xf]  ;;  %v1327_v43 = vor.u32 %v1652_v30, %v1324_v31  ;;  %v1612_v12 = vld [vmem:[%s2520_s1 + $0xa4] sm:$0xf]  ;;  %v1164_v14 = vld [vmem:[%s2520_s1 + $0xa8] sm:$0xf0] }
  0x37   :  { %821 = vmatpush.bf16.msrb.mxu3 %v1119_v40  ;;  %v1634_v40 = vld [vmem:[%s2520_s1 + $0x154] sm:$0xf]  ;;  %v1191_v48 = vor.u32 %v1618_v34, %v1188_v36  ;;  %v1628_v17 = vld [vmem:[%s2520_s1 + $0x124] sm:$0xf]  ;;  %v1228_v20 = vld [vmem:[%s2520_s1 + $0x128] sm:$0xf0]  ;;  %v1167_v23 = vor.u32 %v1612_v12, %v1164_v14 }
  0x38   :  { %784 = vmatpush.bf16.msrb.mxu0 %v1355_v41  ;;  %v1670_v41 = vld [vmem:[%s2520_s1 + $0x274] sm:$0xf]  ;;  %v1255_v52 = vor.u32 %v1634_v40, %v1252_v44  ;;  %v1644_v21 = vld [vmem:[%s2520_s1 + $0x1a4] sm:$0xf]  ;;  %v1156_v25 = vld [vmem:[%s2520_s1 + $0x98] sm:$0xf0]  ;;  %v1231_v28 = vor.u32 %v1628_v17, %v1228_v20 }
  0x39   :  { %797 = vmatpush.bf16.msrb.mxu1 %v1419_v42  ;;  %v1396_v42 = vld [vmem:[%s2520_s1 + $0x278] sm:$0xf0]  ;;  %v1610_v24 = vld [vmem:[%s2520_s1 + $0x94] sm:$0xf]  ;;  %v1148_v40 = vld [vmem:[%s2520_s1 + $0x88] sm:$0xf0] }
  0x3a   :  { %810 = vmatpush.bf16.msrb.mxu2 %v1483_v46  ;;  %v1316_v46 = vld [vmem:[%s2520_s1 + $0x1d8] sm:$0xf0]  ;;  %v1399_v51 = vor.u32 %v1670_v41, %v1396_v42  ;;  %v1626_v30 = vld [vmem:[%s2520_s1 + $0x114] sm:$0xf]  ;;  %v1159_v38 = vor.u32 %v1610_v24, %v1156_v25  ;;  %v1624_v41 = vld [vmem:[%s2520_s1 + $0x104] sm:$0xf] }
  0x3b   :  { %822 = vmatpush.bf16.msrb.mxu3 %v1111_v57  ;;  %v1319_v57 = vor.u32 %v1650_v45, %v1316_v46  ;;  %v1662_v31 = vld [vmem:[%s2520_s1 + $0x234] sm:$0xf]  ;;  %v1284_v37 = vld [vmem:[%s2520_s1 + $0x198] sm:$0xf0]  ;;  %v1212_v44 = vld [vmem:[%s2520_s1 + $0x108] sm:$0xf0] }
  0x3c   :  { %785 = vmatpush.bf16.msrb.mxu0 %v1347_v58  ;;  %v1244_v58 = vld [vmem:[%s2520_s1 + $0x148] sm:$0xf0]  ;;  %v1642_v36 = vld [vmem:[%s2520_s1 + $0x194] sm:$0xf]  ;;  %v1660_v45 = vld [vmem:[%s2520_s1 + $0x224] sm:$0xf] }
  0x3d   :  { %798 = vmatpush.bf16.msrb.mxu1 %v1411_v59  ;;  %v1648_v59 = vld [vmem:[%s2520_s1 + $0x1c4] sm:$0xf]  ;;  %v1247_v3 = vor.u32 %v1632_v53, %v1244_v58  ;;  %v1356_v46 = vld [vmem:[%s2520_s1 + $0x228] sm:$0xf0]  ;;  %v1460_v49 = vld [vmem:[%s2520_s1 + $0x2f8] sm:$0xf0] }
  0x3e   :  { %811 = vmatpush.bf16.msrb.mxu2 %v1475_v63  ;;  %v1172_v63 = vld [vmem:[%s2520_s1 + $0xb8] sm:$0xf0]  ;;  %v1311_v7 = vor.u32 %v1648_v59, %v1308_v60  ;;  %v1702_v50 = vld [vmem:[%s2520_s1 + $0x374] sm:$0xf]  ;;  %v1276_v53 = vld [vmem:[%s2520_s1 + $0x188] sm:$0xf0]  ;;  %v1359_v56 = vor.u32 %v1660_v45, %v1356_v46 }
  0x3f   :  { %823 = vmatpush.bf16.msrb.mxu3 %v1103_v10  ;;  %v1300_v10 = vld [vmem:[%s2520_s1 + $0x1b8] sm:$0xf0]  ;;  %v1175_v11 = vor.u32 %v1614_v62, %v1172_v63  ;;  %v1658_v59 = vld [vmem:[%s2520_s1 + $0x214] sm:$0xf]  ;;  %v1684_v62 = vld [vmem:[%s2520_s1 + $0x2e4] sm:$0xf] }
  0x40   :  { %786 = vmatpush.bf16.msrb.mxu0 %v1339_v15  ;;  %v1383_v15 = vor.u32 %v1666_v5, %v1380_v6  ;;  %v1348_v60 = vld [vmem:[%s2520_s1 + $0x218] sm:$0xf0]  ;;  %v1452_v63 = vld [vmem:[%s2520_s1 + $0x2e8] sm:$0xf0]  ;;  %v1698_v14 = vld [vmem:[%s2520_s1 + $0x354] sm:$0xf] }
  0x41   :  { %799 = vmatpush.bf16.msrb.mxu1 %v1403_v16  ;;  %v1239_v16 = vor.u32 %v1630_v4, %v1236_v8  ;;  %v1516_v4 = vld [vmem:[%s2520_s1 + $0x368] sm:$0xf0]  ;;  %v1351_v5 = vor.u32 %v1658_v59, %v1348_v60  ;;  %v1455_v6 = vor.u32 %v1684_v62, %v1452_v63  ;;  %v1444_v12 = vld [vmem:[%s2520_s1 + $0x2d8] sm:$0xf0] }
  0x42   :  { %812 = vmatpush.bf16.msrb.mxu2 %v1467_v18  ;;  %v1372_v18 = vld [vmem:[%s2520_s1 + $0x248] sm:$0xf0]  ;;  %v1492_v24 = vld [vmem:[%s2520_s1 + $0x338] sm:$0xf0] }
  0x43   :  { %787 = vmatmul.bf16.vlgmr.msrb.gmra.mxu0 %v2174_v27  ;;  %824 = vmatpush.bf16.msrb.mxu3 %v1095_v33  ;;  %v1364_v33 = vld [vmem:[%s2520_s1 + $0x238] sm:$0xf0]  ;;  %v1340_v8 = vld [vmem:[%s2520_s1 + $0x208] sm:$0xf0] }
  0x44   :  { %831 = vmatpush.bf16.msra.mxu0 %v1207_v19  ;;  %800 = vmatmul.bf16.vlgmr.msrb.gmra.mxu1 %v2179_v29  ;;  %v1303_v19 = vor.u32 %v1646_v9, %v1300_v10  ;;  %v1367_v42 = vor.u32 %v1662_v31, %v1364_v33  ;;  %v1711_v9 = vld [vmem:[%s2522_s2 + $0x38] sm:$0xff]  ;;  %v1484_v31 = vld [vmem:[%s2520_s1 + $0x328] sm:$0xf0] }
  0x45   :  { %844 = vmatpush.bf16.msra.mxu1 %v1271_v22  ;;  %813 = vmatmul.bf16.vlgmr.msrb.gmra.mxu2 %v2187_v32  ;;  %v1292_v22 = vld [vmem:[%s2520_s1 + $0x1a8] sm:$0xf0] }
  0x46   :  { %857 = vmatpush.bf16.msra.mxu2 %v1335_v26  ;;  %v1295_v34 = vor.u32 %v1644_v21, %v1292_v22  ;;  %v1678_v21 = vld [vmem:[%s2520_s1 + $0x2b4] sm:$0xf]  ;;  %v1428_v22 = vld [vmem:[%s2520_s1 + $0x2b8] sm:$0xf0] }
  0x47   :  { %825 = vmatpush.bf16.msrb.mxu3 %v1087_v47  ;;  %v1287_v47 = vor.u32 %v1642_v36, %v1284_v37  ;;  %v1431_v25 = vor.u32 %v1678_v21, %v1428_v22  ;;  %v1412_v36 = vld [vmem:[%s2520_s1 + $0x298] sm:$0xf0]  ;;  %v1690_v37 = vld [vmem:[%s2520_s1 + $0x314] sm:$0xf]  ;;  %v1713_v21 = vld [vmem:[%s2522_s2 + $0x48] sm:$0xff] }
  0x48   :  { %832 = vmatpush.bf16.msra.mxu0 %v1199_v35  ;;  %v1220_v35 = vld [vmem:[%s2520_s1 + $0x118] sm:$0xf0] }
  0x49   :  { %845 = vmatpush.bf16.msra.mxu1 %v1263_v39  ;;  %v1608_v39 = vld [vmem:[%s2520_s1 + $0x84] sm:$0xf] }
  0x4a   :  { %858 = vmatpush.bf16.msra.mxu2 %v1327_v43  ;;  %826 = vmatmul.bf16.vlgmr.msrb.gmra.mxu3 %v2006_v1  ;;  %v1664_v1 = vld [vmem:[%s2520_s1 + $0x244] sm:$0xf]  ;;  %v1223_v43 = vor.u32 %v1626_v30, %v1220_v35  ;;  %v1151_v55 = vor.u32 %v1608_v39, %v1148_v40  ;;  %v1674_v35 = vld [vmem:[%s2520_s1 + $0x294] sm:$0xf] }
  0x4b   :  { %870 = vmatpush.bf16.msra.mxu3 %v1399_v51  ;;  %v1375_v26 = vor.u32 %v1664_v1, %v1372_v18  ;;  %v1524_v51 = vld [vmem:[%s2520_s1 + $0x378] sm:$0xf0]  ;;  %v1436_v18 = vld [vmem:[%s2520_s1 + $0x2c8] sm:$0xf0]  ;;  %v1692_v30 = vld [vmem:[%s2520_s1 + $0x324] sm:$0xf]  ;;  %v1415_v39 = vor.u32 %v1674_v35, %v1412_v36 }
  0x4c   :  { %833 = vmatpush.bf16.msra.mxu0 %v1191_v48  ;;  %v1686_v48 = vld [vmem:[%s2520_s1 + $0x2f4] sm:$0xf] }
  0x4d   :  { %846 = vmatpush.bf16.msra.mxu1 %v1255_v52  ;;  %v1640_v52 = vld [vmem:[%s2520_s1 + $0x184] sm:$0xf]  ;;  %v1463_v58 = vor.u32 %v1686_v48, %v1460_v49  ;;  %v1709_v48 = vld [vmem:[%s2522_s2 + $0x28] sm:$0xff] }
  0x4e   :  { %859 = vmatpush.bf16.msra.mxu2 %v1319_v57  ;;  %v1215_v57 = vor.u32 %v1624_v41, %v1212_v44  ;;  %v1672_v41 = vld [vmem:[%s2520_s1 + $0x284] sm:$0xf]  ;;  %v1468_v44 = vld [vmem:[%s2520_s1 + $0x308] sm:$0xf0] }
  0x4f   :  { %871 = vmatpush.bf16.msra.mxu3 %v1391_v0  ;;  %v1279_v0 = vor.u32 %v1640_v52, %v1276_v53  ;;  %v1708_v49 = vld [vmem:[%s2522_s2 + $0x20] sm:$0xff] }
  0x50   :  { %834 = vmatpush.bf16.msra.mxu0 %v1183_v61  ;;  %v1527_v61 = vor.u32 %v1702_v50, %v1524_v51  ;;  %v1705_v50 = vld [vmem:[%s2522_s2 + $0x8] sm:$0xff] }
  0x51   :  { %847 = vmatpush.bf16.msra.mxu1 %v1247_v3  ;;  %v1700_v3 = vld [vmem:[%s2520_s1 + $0x364] sm:$0xf] }
  0x52   :  { %860 = vmatpush.bf16.msra.mxu2 %v1311_v7  ;;  %v1656_v7 = vld [vmem:[%s2520_s1 + $0x204] sm:$0xf]  ;;  %v1519_v10 = vor.u32 %v1700_v3, %v1516_v4 }
  0x53   :  { %872 = vmatpush.bf16.msra.mxu3 %v1383_v15  ;;  %v1508_v15 = vld [vmem:[%s2520_s1 + $0x358] sm:$0xf0] }
  0x54   :  { %835 = vmatpush.bf16.msra.mxu0 %v1175_v11  ;;  %v1682_v11 = vld [vmem:[%s2520_s1 + $0x2d4] sm:$0xf]  ;;  %v1511_v1 = vor.u32 %v1698_v14, %v1508_v15 }
  0x55   :  { %848 = vmatpush.bf16.msra.mxu1 %v1239_v16  ;;  %v1343_v16 = vor.u32 %v1656_v7, %v1340_v8  ;;  %v1447_v17 = vor.u32 %v1682_v11, %v1444_v12  ;;  %v1719_v7 = vld [vmem:[%s2522_s2 + $0x78] sm:$0xff]  ;;  %v1717_v11 = vld [vmem:[%s2522_s2 + $0x68] sm:$0xff] }
  0x56   :  { %861 = vmatpush.bf16.msra.mxu2 %v1303_v19  ;;  %v1696_v19 = vld [vmem:[%s2520_s1 + $0x344] sm:$0xf] }
  0x57   :  { %873 = vmatpush.bf16.msra.mxu3 %v1375_v26 }
  0x58   :  { %836 = vmatpush.bf16.msra.mxu0 %v1167_v23  ;;  %v1694_v23 = vld [vmem:[%s2520_s1 + $0x334] sm:$0xf] }
  0x59   :  { %849 = vmatpush.bf16.msra.mxu1 %v1231_v28  ;;  %v1495_v26 = vor.u32 %v1694_v23, %v1492_v24  ;;  %v1676_v28 = vld [vmem:[%s2520_s1 + $0x2a4] sm:$0xf] }
  0x5a   :  { %862 = vmatpush.bf16.msra.mxu2 %v1295_v34  ;;  %v1487_v34 = vor.u32 %v1692_v30, %v1484_v31  ;;  %v1712_v24 = vld [vmem:[%s2522_s2 + $0x40] sm:$0xff] }
  0x5b   :  { %874 = vmatpush.bf16.msra.mxu3 %v1367_v42  ;;  %v1404_v42 = vld [vmem:[%s2520_s1 + $0x288] sm:$0xf0] }
  0x5c   :  { %837 = vmatpush.bf16.msra.mxu0 %v1159_v38  ;;  %v1476_v38 = vld [vmem:[%s2520_s1 + $0x318] sm:$0xf0]  ;;  %v1407_v45 = vor.u32 %v1672_v41, %v1404_v42 }
  0x5d   :  { %850 = vmatpush.bf16.msra.mxu1 %v1223_v43  ;;  %v1479_v40 = vor.u32 %v1690_v37, %v1476_v38  ;;  %v1688_v43 = vld [vmem:[%s2520_s1 + $0x304] sm:$0xf] }
  0x5e   :  { %863 = vmatpush.bf16.msra.mxu2 %v1287_v47  ;;  %v1471_v46 = vor.u32 %v1688_v43, %v1468_v44  ;;  %v1710_v47 = vld [vmem:[%s2522_s2 + $0x30] sm:$0xff] }
  0x5f   :  { %875 = vmatpush.bf16.msra.mxu3 %v1359_v56  ;;  %v17_v56 = vld [vmem:[%s2523_s3] ss:$8 sm:$0x3] }
  0x60   :  { %838 = vmatpush.bf16.msra.mxu0 %v1151_v55  ;;  %v1704_v55 = vld [vmem:[%s2522_s2] sm:$0xff] }
  0x61   :  { %851 = vmatpush.bf16.msra.mxu1 %v1215_v57  ;;  %v138_v57 = vperm.slane %v17_v56, 0 }
  0x62   :  { %864 = vmatpush.bf16.msra.mxu2 %v1279_v0 }
  0x63   :  { %839 = vmatmul.bf16.vlgmr.msra.gmra.mxu0 %v2008_v2  ;;  %876 = vmatpush.bf16.msra.mxu3 %v1351_v5  ;;  %v1680_v2 = vld [vmem:[%s2520_s1 + $0x2c4] sm:$0xf] }
  0x64   :  { %883 = vmatpush.bf16.msrb.mxu0 %v1463_v58  ;;  %852 = vmatmul.bf16.vlgmr.msra.gmra.mxu1 %v1988_v54  ;;  %v1500_v54 = vld [vmem:[%s2520_s1 + $0x348] sm:$0xf0] }
  0x65   :  { %896 = vmatpush.bf16.msrb.mxu1 %v1527_v61  ;;  %865 = vmatmul.bf16.vlgmr.msra.gmra.mxu2 %v2029_v13  ;;  %v1439_v13 = vor.u32 %v1680_v2, %v1436_v18  ;;  %v1503_v20 = vor.u32 %v1696_v19, %v1500_v54  ;;  %v1716_v2 = vld [vmem:[%s2522_s2 + $0x60] sm:$0xff]  ;;  %v1715_v19 = vld [vmem:[%s2522_s2 + $0x58] sm:$0xff] }
  0x66   :  { %1041 = vmatpush.bf16.msrb.mxu2 %v1711_v9  ;;  %v1718_v9 = vld [vmem:[%s2522_s2 + $0x70] sm:$0xff] }
  0x67   :  { %877 = vmatpush.bf16.msra.mxu3 %v1343_v16 }
  0x68   :  { %884 = vmatpush.bf16.msrb.mxu0 %v1455_v6 }
  0x69   :  { %897 = vmatpush.bf16.msrb.mxu1 %v1519_v10 }
  0x6a   :  { %878 = vmatmul.bf16.vlgmr.msra.gmra.mxu3 %v2174_v27  ;;  %v1420_v27 = vld [vmem:[%s2520_s1 + $0x2a8] sm:$0xf0]  ;;  %1042 = vmatpush.bf16.msrb.mxu2 %v1710_v47 }
  0x6b   :  { %v1423_v33 = vor.u32 %v1676_v28, %v1420_v27  ;;  %1054 = vmatpush.bf16.msrb.mxu3 %v1719_v7 }
  0x6c   :  { %885 = vmatpush.bf16.msrb.mxu0 %v1447_v17 }
  0x6d   :  { %898 = vmatpush.bf16.msrb.mxu1 %v1511_v1 }
  0x6e   :  { %1043 = vmatpush.bf16.msrb.mxu2 %v1709_v48 }
  0x6f   :  { %1055 = vmatpush.bf16.msrb.mxu3 %v1718_v9 }
  0x70   :  { %886 = vmatpush.bf16.msrb.mxu0 %v1439_v13  ;;  %v1714_v13 = vld [vmem:[%s2522_s2 + $0x50] sm:$0xff] }
  0x71   :  { %899 = vmatpush.bf16.msrb.mxu1 %v1503_v20 }
  0x72   :  { %1044 = vmatpush.bf16.msrb.mxu2 %v1708_v49  ;;  %v18_v49 = vld [vmem:[%s2523_s3 + $0x1] ss:$0 sm:$0xff] }
  0x73   :  { %1056 = vmatpush.bf16.msrb.mxu3 %v1717_v11 }
  0x74   :  { %887 = vmatpush.bf16.msrb.mxu0 %v1431_v25  ;;  %v139_v25 = vperm.slane %v17_v56, 1 }
  0x75   :  { %900 = vmatpush.bf16.msrb.mxu1 %v1495_v26 }
  0x77   :  { %1057 = vmatpush.bf16.msrb.mxu3 %v1716_v2 }
  0x78   :  { %888 = vmatpush.bf16.msrb.mxu0 %v1423_v33 }
  0x79   :  { %901 = vmatpush.bf16.msrb.mxu1 %v1487_v34 }
  0x7b   :  { %1058 = vmatpush.bf16.msrb.mxu3 %v1715_v19 }
  0x7c   :  { %889 = vmatpush.bf16.msrb.mxu0 %v1415_v39 }
  0x7d   :  { %902 = vmatpush.bf16.msrb.mxu1 %v1479_v40 }
  0x7f   :  { %1059 = vmatpush.bf16.msrb.mxu3 %v1714_v13 }
  0x80   :  { %890 = vmatpush.bf16.msrb.mxu0 %v1407_v45 }
  0x81   :  { %903 = vmatpush.bf16.msrb.mxu1 %v1471_v46 }
  0x83   :  { %891 = vmatmul.bf16.vlgmr.msrb.gmra.mxu0 %v2179_v29  ;;  %v1707_v29 = vld [vmem:[%s2522_s2 + $0x18] sm:$0xff]  ;;  %1060 = vmatpush.bf16.msrb.mxu3 %v1713_v21 }
  0x84   :  { %904 = vmatmul.bf16.vlgmr.msrb.gmra.mxu1 %v2187_v32  ;;  %1045 = vmatpush.bf16.msrb.mxu2 %v1707_v29  ;;  %v1706_v32 = vld [vmem:[%s2522_s2 + $0x10] sm:$0xff] }
  0x87   :  { %1061 = vmatpush.bf16.msrb.mxu3 %v1712_v24 }
  0x88   :  { %1046 = vmatpush.bf16.msrb.mxu2 %v1706_v32 }
  0x8c   :  { %1047 = vmatpush.bf16.msrb.mxu2 %v1705_v50 }
  0x90   :  { %1048 = vmatpush.bf16.msrb.mxu2 %v1704_v55 }
  0xa0   :  { %v736_v51 = vpop.f32.mrf.mxu0 }
  0xa1   :  { %v749_v52 = vpop.f32.mrf.mxu1  ;;  %v737_v61 = vadd.f32 %v736_v51, %v138_v57  ;;  %v19_v51 = vld [vmem:[%s2523_s3 + $0x2] ss:$0 sm:$0xff]  ;;  %v20_v57 = vld [vmem:[%s2523_s3 + $0x3] ss:$0 sm:$0xff] }
  0xa3   :  { %v750_v63 = vadd.f32 %v749_v52, %v737_v61 }
  0xa8   :  { %v762_v53 = vpop.f32.mrf.mxu2  ;;  %v738_v58 = vpop.f32.mrf.mxu0 }
  0xa9   :  { %v751_v59 = vpop.f32.mrf.mxu1  ;;  %v763_v3 = vadd.f32 %v762_v53, %v750_v63 }
  0xad   :  { %v775_v60 = vpop.f32.mrf.mxu3 }
  0xae   :  { %v776_v4 = vadd.f32 %v775_v60, %v763_v3 }
  0xb0   :  { %v764_v62 = vpop.f32.mrf.mxu2 }
  0xb5   :  { %v777_v0 = vpop.f32.mrf.mxu3 }
  0xc0   :  { %v788_v5 = vpop.f32.mrf.mxu0 }
  0xc1   :  { %v801_v6 = vpop.f32.mrf.mxu1  ;;  %v789_v8 = vadd.f32 %v788_v5, %v776_v4 }
  0xc3   :  { %v802_v10 = vadd.f32 %v801_v6, %v789_v8 }
  0xc8   :  { %v814_v12 = vpop.f32.mrf.mxu2  ;;  %v790_v15 = vpop.f32.mrf.mxu0 }
  0xc9   :  { %v815_v14 = vadd.f32 %v814_v12, %v802_v10  ;;  %v803_v16 = vpop.f32.mrf.mxu1 }
  0xcb   :  { %v909_v17 = vmax.f32 %v815_v14, 0.0 }
  0xcd   :  { %v911_v1 = vpack.c.bf16 %v909_v17, %v909_v17  ;;  %v827_v18 = vpop.f32.mrf.mxu3 }
  0xce   :  { %v828_v30 = vadd.f32 %v827_v18, %v139_v25 }
  0xcf   :  { %1049 = vmatmul.bf16.vlgmr.msrb.gmra.mxu2 %v911_v1 }
  0xd0   :  { %v816_v54 = vpop.f32.mrf.mxu2 }
  0xd5   :  { %v829_v20 = vpop.f32.mrf.mxu3 }
  0xe0   :  { %v840_v22 = vpop.f32.mrf.mxu0 }
  0xe1   :  { %v853_v23 = vpop.f32.mrf.mxu1  ;;  %v841_v33 = vadd.f32 %v840_v22, %v828_v30 }
  0xe3   :  { %v854_v35 = vadd.f32 %v853_v23, %v841_v33 }
  0xe8   :  { %v842_v26 = vpop.f32.mrf.mxu0  ;;  %v866_v28 = vpop.f32.mrf.mxu2 }
  0xe9   :  { %v855_v27 = vpop.f32.mrf.mxu1  ;;  %v867_v37 = vadd.f32 %v866_v28, %v854_v35 }
  0xed   :  { %v879_v31 = vpop.f32.mrf.mxu3 }
  0xee   :  { %v880_v38 = vadd.f32 %v879_v31, %v867_v37 }
  0xf0   :  { %v868_v34 = vpop.f32.mrf.mxu2 }
  0xf5   :  { %v881_v36 = vpop.f32.mrf.mxu3 }
 0x100   :  { %v892_v39 = vpop.f32.mrf.mxu0 }
 0x101   :  { %v893_v40 = vadd.f32 %v892_v39, %v880_v38  ;;  %v905_v41 = vpop.f32.mrf.mxu1 }
 0x103   :  { %v906_v42 = vadd.f32 %v905_v41, %v893_v40 }
 0x105   :  { %v910_v43 = vmax.f32 %v906_v42, 0.0 }
 0x107   :  { %v912_v44 = vpack.c.bf16 %v910_v43, %v910_v43 }
 0x108   :  { %v894_v45 = vpop.f32.mrf.mxu0 }
 0x109   :  { %v907_v46 = vpop.f32.mrf.mxu1  ;;  %1062 = vmatmul.bf16.vlgmr.msrb.gmra.mxu3 %v912_v44 }
 0x152   :  { %v1050_v47 = vpop.f32.mrf.mxu2 }
 0x153   :  { %v1051_v29 = vadd.f32 %v1050_v47, %v18_v49 }
 0x15a   :  { %v1052_v48 = vpop.f32.mrf.mxu2 }
 0x18c   :  { %v1063_v32 = vpop.f32.mrf.mxu3 }
 0x18d   :  { %v1064_v50 = vadd.f32 %v1063_v32, %v1051_v29 }
 0x18f   :  { %v1067_v52 = vmax.f32 %v1064_v50, 0.0 }
 0x191   :  { %v1068_v53 = vmul.f32 %v1067_v52, %v19_v51 }
 0x193   :  { %v1070_v55 = vsel %vm1069_vm0, %v1068_v53, 0.0 }
 0x194   :  { %v1065_v56 = vpop.f32.mrf.mxu3  ;;  %1071 = vadd.xlane.f32.xlu0 %v1070_v55 }
 0x207   :  { %v1072_v58 = vpop.xlane.xlu0 %1071 }
 0x208   :  { %v1073_v59 = vadd.f32 %v1072_v58, %v20_v57 }
 0x20a   :  { %1075 = vst.msk [vmem:[%s2524_s4] sm:$0xff] %vm1074_vm1, %v1073_v59 }

</bundles_post_ra>
